<compile_context>
chip_gen: v7x
topology: tpu7x:2x2x1
jax: 0.10.0
libtpu: 0.0.40
codegen_flags: <defaults>
</compile_context>

<pallas_src>
import functools

import jax
import jax.numpy as jnp
from jax import lax
from jax.experimental import pallas as pl
from jax.experimental.pallas import tpu as pltpu

NEG_SLOPE = 0.01      # nn.LeakyReLU default negative_slope
NUM_TOKENS = 13
EMB_DIM = 3
SEQ_LEN = 20          # 20 tokens * 3 dims = 60 flattened embedding features
E_FLAT = SEQ_LEN * EMB_DIM   # 60
F_IN = 60             # seq_features: Linear(60, 15)
F_OUT = 15
H1 = 25               # fc1: Linear(75, 25)
H2 = 10               # fc2: Linear(25, 10)


def _leaky(x):
    return jnp.where(x > 0, x, NEG_SLOPE * x)


def _default_tb():
    """Batch tile that amortizes the ~0.35 us per-grid-step overhead."""
    try:
        kind = jax.devices()[0].device_kind.lower()
    except Exception:
        return 8192
    if "v5" in kind:
        return 4096
    if "7" in kind:
        return 16384
    return 8192


def airfit_kernel(e_ref, f_ref, w1e_ref, w1f_ref, b1_ref, w2_ref, b2_ref,
                  wo_ref, bo_ref, out_ref):
    # e_ref, f_ref : (TB, 60) bf16, batch-major blocks (no host transpose).
    # Weights are tiny, full-array, constant-index blocks -> VMEM-resident.
    # fc1 with seq_features folded in, contracting the feature axis of BOTH
    # operands (A @ B.T, the same pattern as q@k.T in flash attention), so the
    # result (25, TB) has the batch on the 128-lane axis.
    dn = (((1,), (1,)), ((), ()))
    h = lax.dot_general(w1e_ref[...], e_ref[...], dn,
                        preferred_element_type=jnp.float32)          # (25, TB)
    h = h + lax.dot_general(w1f_ref[...], f_ref[...], dn,
                            preferred_element_type=jnp.float32)      # (25, TB)
    h = _leaky(h + b1_ref[...])                                      # relu1, f32
    # fc2: (10,25) @ (25,TB) -> (10,TB)
    h = jnp.dot(w2_ref[...], h.astype(jnp.bfloat16),
                preferred_element_type=jnp.float32)
    h = _leaky(h + b2_ref[...])                                      # relu2, f32
    # output Linear(10,1): VPU multiply + sublane reduce -> lane-dense (1, TB)
    out_ref[...] = jnp.sum(h * wo_ref[...], axis=0, keepdims=True) + bo_ref[...]


@functools.partial(jax.jit, static_argnames=("tb",))
def _airfit_forward_jit(e_idx, f, params, *, tb):
    B = e_idx.shape[0]

    # Clamp the tile so tiny batches don't pay for a huge padded tile; keep it
    # a multiple of 128 so the BlockSpec (8,128) divisibility rule holds.
    tb_eff = min(tb, pl.cdiv(B, 128) * 128)
    num_tiles = pl.cdiv(B, tb_eff)
    bp = num_tiles * tb_eff

    # ---- glue (single XLA fusion under jit) -------------------------------
    # Embedding gather -> (B, 60) bf16 slab.  Kept host-side on purpose: an
    # in-kernel gather/one-hot path is a second-order win vs. this fused op.
    e = params["emb"][e_idx].reshape(B, E_FLAT).astype(jnp.bfloat16)
    fb = f.astype(jnp.bfloat16)
    if bp != B:
        pad = ((0, bp - B), (0, 0))
        e = jnp.pad(e, pad)          # zero rows -> discarded after the kernel
        fb = jnp.pad(fb, pad)

    # Fold seq_features (Linear 60->15, applied before the concat) into fc1:
    #   cat(e, f @ Wseq.T + bseq) @ W1.T + b1
    #     == e @ W1e.T + f @ (W1f @ Wseq).T + (b1 + bseq @ W1f.T)      (exact)
    w1 = params["w1"]                                   # (25, 75)
    w1e, w1f = w1[:, :E_FLAT], w1[:, E_FLAT:]           # (25,60), (25,15)
    w1f_fold = w1f @ params["wseq"]                     # (25, 60)
    b1c = params["b1"] + params["bseq"] @ w1f.T         # (25,)

    args = (
        e,                                              # (Bp, 60) bf16
        fb,                                             # (Bp, 60) bf16
        w1e.astype(jnp.bfloat16),                       # (25, 60) bf16
        w1f_fold.astype(jnp.bfloat16),                  # (25, 60) bf16
        b1c[:, None].astype(jnp.float32),               # (25, 1)  f32
        params["w2"].astype(jnp.bfloat16),              # (10, 25) bf16
        params["b2"][:, None].astype(jnp.float32),      # (10, 1)  f32
        params["wo"].T.astype(jnp.float32),             # (10, 1)  f32 (VPU layer)
        params["bo"][None, :].astype(jnp.float32),      # (1, 1)   f32
    )

    def const_spec(a):
        # Full-array block, identical for every grid step -> stays VMEM-resident.
        shape = a.shape
        return pl.BlockSpec(shape, lambda i: (0,) * len(shape))

    out = pl.pallas_call(
        airfit_kernel,
        out_shape=jax.ShapeDtypeStruct((1, bp), jnp.float32),
        grid=(num_tiles,),
        in_specs=[
            pl.BlockSpec((tb_eff, E_FLAT), lambda i: (i, 0)),   # batch-tiled e
            pl.BlockSpec((tb_eff, F_IN), lambda i: (i, 0)),     # batch-tiled f
            const_spec(args[2]),
            const_spec(args[3]),
            const_spec(args[4]),
            const_spec(args[5]),
            const_spec(args[6]),
            const_spec(args[7]),
            const_spec(args[8]),
        ],
        out_specs=pl.BlockSpec((1, tb_eff), lambda i: (0, i)),  # lane-dense out
        compiler_params=pltpu.CompilerParams(
            dimension_semantics=("parallel",)),                 # megacore split
    )(*args)

    return out[0, :B].reshape(B, 1)


def airfit_forward(e_idx, f, params, *, tb=None):
    """e_idx: (B, 20) int32 token ids in [0, 13); f: (B, 60) float32 -> (B, 1)."""
    if tb is None:
        tb = _default_tb()
    assert tb % 128 == 0, f"batch tile tb={tb} must be a multiple of 128"
    return _airfit_forward_jit(e_idx, f, params, tb=tb)


def init_params(key):
    ks = jax.random.split(key, 9)
    emb = jax.random.normal(ks[0], (NUM_TOKENS, EMB_DIM), jnp.float32) * 0.1
    emb = emb.at[0].set(0.0)  # matches torch: embedding.weight[0] = zeros(3)
    wseq = jax.random.normal(ks[1], (F_OUT, F_IN), jnp.float32) * 0.1
    bseq = jax.random.normal(ks[2], (F_OUT,), jnp.float32) * 0.1
    w1 = jax.random.normal(ks[3], (H1, E_FLAT + F_OUT), jnp.float32) * 0.1
    b1 = jax.random.normal(ks[4], (H1,), jnp.float32) * 0.1
    w2 = jax.random.normal(ks[5], (H2, H1), jnp.float32) * 0.1
    b2 = jax.random.normal(ks[6], (H2,), jnp.float32) * 0.1
    wo = jax.random.normal(ks[7], (1, H2), jnp.float32) * 0.1
    bo = jax.random.normal(ks[8], (1,), jnp.float32) * 0.1
    return dict(emb=emb, wseq=wseq, bseq=bseq, w1=w1, b1=b1,
                w2=w2, b2=b2, wo=wo, bo=bo)


def reference(e_idx, f, p):
    """Pure-JAX f32 mirror of the PyTorch forward (correctness check)."""
    e = p["emb"][e_idx].reshape(e_idx.shape[0], -1)   # (B, 60)
    fp = f @ p["wseq"].T + p["bseq"]                  # (B, 15)
    x = jnp.concatenate([e, fp], axis=1)              # (B, 75)
    x = _leaky(x @ p["w1"].T + p["b1"])
    x = _leaky(x @ p["w2"].T + p["b2"])
    return x @ p["wo"].T + p["bo"]                    # (B, 1)


if __name__ == "__main__":
    key = jax.random.PRNGKey(0)
    kp, ke, kf = jax.random.split(key, 3)
    params = init_params(kp)

    # Small-shape check (single tile, default device-tuned tb clamped to 128).
    B = 2
    e_idx = jax.random.randint(ke, (B, SEQ_LEN), 0, NUM_TOKENS, dtype=jnp.int32)
    f = jax.random.normal(kf, (B, F_IN), jnp.float32)

    out = airfit_forward(e_idx, f, params)
    jax.block_until_ready(out)
    ref = reference(e_idx, f, params)
    assert out.shape == (B, 1), out.shape
    # bf16 wire format with f32 accumulation -> loose-ish tolerance (intentional).
    assert jnp.allclose(out, ref, atol=2e-2, rtol=2e-2), (out, ref)

    # Multi-tile check (exercises the batch grid + ragged-last-tile padding).
    B2 = 300
    ke2, kf2 = jax.random.split(jax.random.PRNGKey(1))
    e_idx2 = jax.random.randint(ke2, (B2, SEQ_LEN), 0, NUM_TOKENS,
                                dtype=jnp.int32)
    f2 = jax.random.normal(kf2, (B2, F_IN), jnp.float32)
    out2 = airfit_forward(e_idx2, f2, params, tb=128)
    jax.block_until_ready(out2)
    ref2 = reference(e_idx2, f2, params)
    assert out2.shape == (B2, 1), out2.shape
    assert jnp.allclose(out2, ref2, atol=2e-2, rtol=2e-2)

    print("KERNEL_OK")
</pallas_src>

<mosaic_0001>
module attributes {stable_mosaic.version = 11 : i64} {
  func.func @airfit_kernel(%arg0: i32, %arg1: memref<128x60xbf16, #tpu.memory_space<vmem>>, %arg2: memref<128x60xbf16, #tpu.memory_space<vmem>>, %arg3: memref<25x60xbf16, #tpu.memory_space<vmem>>, %arg4: memref<25x60xbf16, #tpu.memory_space<vmem>>, %arg5: memref<25x1xf32, #tpu.memory_space<vmem>>, %arg6: memref<10x25xbf16, #tpu.memory_space<vmem>>, %arg7: memref<10x1xf32, #tpu.memory_space<vmem>>, %arg8: memref<10x1xf32, #tpu.memory_space<vmem>>, %arg9: memref<1x1xf32, #tpu.memory_space<vmem>>, %arg10: memref<1x128xf32, #tpu.memory_space<vmem>>) attributes {dimension_semantics = [#tpu.dimension_semantics<parallel>], iteration_bounds = array<i64: 1>, scalar_prefetch = 0 : i64, scratch_operands = 0 : i64, tpu.core_type = #tpu.core_type<tc>, window_params = [{transform_indices = @transform_0, window_bounds = array<i64: 128, 60>}, {transform_indices = @transform_1, window_bounds = array<i64: 128, 60>}, {pipeline_mode = #tpu.pipeline_mode<synchronous>, transform_indices = @transform_2, window_bounds = array<i64: 25, 60>}, {pipeline_mode = #tpu.pipeline_mode<synchronous>, transform_indices = @transform_3, window_bounds = array<i64: 25, 60>}, {pipeline_mode = #tpu.pipeline_mode<synchronous>, transform_indices = @transform_4, window_bounds = array<i64: 25, 1>}, {pipeline_mode = #tpu.pipeline_mode<synchronous>, transform_indices = @transform_5, window_bounds = array<i64: 10, 25>}, {pipeline_mode = #tpu.pipeline_mode<synchronous>, transform_indices = @transform_6, window_bounds = array<i64: 10, 1>}, {pipeline_mode = #tpu.pipeline_mode<synchronous>, transform_indices = @transform_7, window_bounds = array<i64: 10, 1>}, {pipeline_mode = #tpu.pipeline_mode<synchronous>, transform_indices = @transform_8, window_bounds = array<i64: 1, 1>}, {transform_indices = @transform_9, window_bounds = array<i64: 1, 128>}]} {
    %c0 = arith.constant 0 : index
    %c0_0 = arith.constant 0 : index
    %0 = vector.load %arg3[%c0, %c0_0] : memref<25x60xbf16, #tpu.memory_space<vmem>>, vector<25x60xbf16>
    %c0_1 = arith.constant 0 : index
    %c0_2 = arith.constant 0 : index
    %1 = vector.load %arg1[%c0_1, %c0_2] : memref<128x60xbf16, #tpu.memory_space<vmem>>, vector<128x60xbf16>
    %cst = arith.constant dense<0.000000e+00> : vector<25x128xf32>
    %2 = tpu.matmul %0, %1, %cst {dimension_numbers = #tpu.dot_dimension_numbers<[1], [1], [0], [0], [0, 0, 1, 0], [], []>} : vector<25x60xbf16>, vector<128x60xbf16>, vector<25x128xf32> -> vector<25x128xf32>
    %c0_3 = arith.constant 0 : index
    %c0_4 = arith.constant 0 : index
    %3 = vector.load %arg4[%c0_3, %c0_4] : memref<25x60xbf16, #tpu.memory_space<vmem>>, vector<25x60xbf16>
    %c0_5 = arith.constant 0 : index
    %c0_6 = arith.constant 0 : index
    %4 = vector.load %arg2[%c0_5, %c0_6] : memref<128x60xbf16, #tpu.memory_space<vmem>>, vector<128x60xbf16>
    %cst_7 = arith.constant dense<0.000000e+00> : vector<25x128xf32>
    %5 = tpu.matmul %3, %4, %cst_7 {dimension_numbers = #tpu.dot_dimension_numbers<[1], [1], [0], [0], [0, 0, 1, 0], [], []>} : vector<25x60xbf16>, vector<128x60xbf16>, vector<25x128xf32> -> vector<25x128xf32>
    %6 = arith.addf %2, %5 : vector<25x128xf32>
    %c0_8 = arith.constant 0 : index
    %c0_9 = arith.constant 0 : index
    %7 = vector.load %arg5[%c0_8, %c0_9] : memref<25x1xf32, #tpu.memory_space<vmem>>, vector<25x1xf32>
    %8 = vector.broadcast %7 : vector<25x1xf32> to vector<25x128xf32>
    %9 = arith.addf %6, %8 : vector<25x128xf32>
    %cst_10 = arith.constant 0.000000e+00 : f32
    %10 = vector.broadcast %cst_10 : f32 to vector<25x128xf32>
    %11 = arith.cmpf ogt, %9, %10 : vector<25x128xf32>
    %cst_11 = arith.constant 0.00999999977 : f32
    %12 = vector.broadcast %cst_11 : f32 to vector<25x128xf32>
    %13 = arith.mulf %12, %9 : vector<25x128xf32>
    %14 = arith.select %11, %9, %13 : vector<25x128xi1>, vector<25x128xf32>
    %c0_12 = arith.constant 0 : index
    %c0_13 = arith.constant 0 : index
    %15 = vector.load %arg6[%c0_12, %c0_13] : memref<10x25xbf16, #tpu.memory_space<vmem>>, vector<10x25xbf16>
    %16 = arith.truncf %14 : vector<25x128xf32> to vector<25x128xbf16>
    %cst_14 = arith.constant dense<0.000000e+00> : vector<10x128xf32>
    %17 = tpu.matmul %15, %16, %cst_14 {dimension_numbers = #tpu.dot_dimension_numbers<[1], [0], [0], [1], [0, 0, 1, 1], [], []>} : vector<10x25xbf16>, vector<25x128xbf16>, vector<10x128xf32> -> vector<10x128xf32>
    %c0_15 = arith.constant 0 : index
    %c0_16 = arith.constant 0 : index
    %18 = vector.load %arg7[%c0_15, %c0_16] : memref<10x1xf32, #tpu.memory_space<vmem>>, vector<10x1xf32>
    %19 = vector.broadcast %18 : vector<10x1xf32> to vector<10x128xf32>
    %20 = arith.addf %17, %19 : vector<10x128xf32>
    %cst_17 = arith.constant 0.000000e+00 : f32
    %21 = vector.broadcast %cst_17 : f32 to vector<10x128xf32>
    %22 = arith.cmpf ogt, %20, %21 : vector<10x128xf32>
    %cst_18 = arith.constant 0.00999999977 : f32
    %23 = vector.broadcast %cst_18 : f32 to vector<10x128xf32>
    %24 = arith.mulf %23, %20 : vector<10x128xf32>
    %25 = arith.select %22, %20, %24 : vector<10x128xi1>, vector<10x128xf32>
    %c0_19 = arith.constant 0 : index
    %c0_20 = arith.constant 0 : index
    %26 = vector.load %arg8[%c0_19, %c0_20] : memref<10x1xf32, #tpu.memory_space<vmem>>, vector<10x1xf32>
    %27 = vector.broadcast %26 : vector<10x1xf32> to vector<10x128xf32>
    %28 = arith.mulf %25, %27 : vector<10x128xf32>
    %cst_21 = arith.constant dense<0.000000e+00> : vector<128xf32>
    %29 = vector.multi_reduction <add>, %28, %cst_21 [0] : vector<10x128xf32> to vector<128xf32>
    %30 = vector.shape_cast %29 : vector<128xf32> to vector<1x128xf32>
    %c0_22 = arith.constant 0 : index
    %c0_23 = arith.constant 0 : index
    %31 = vector.load %arg9[%c0_22, %c0_23] : memref<1x1xf32, #tpu.memory_space<vmem>>, vector<1x1xf32>
    %32 = vector.broadcast %31 : vector<1x1xf32> to vector<1x128xf32>
    %33 = arith.addf %30, %32 : vector<1x128xf32>
    %c0_24 = arith.constant 0 : index
    %c0_25 = arith.constant 0 : index
    %34 = vector.load %arg10[%c0_24, %c0_25] : memref<1x128xf32, #tpu.memory_space<vmem>>, vector<1x128xf32>
    tpu.vector_store %arg10[%c0_24, %c0_25], %33 {strides = array<i32>} : memref<1x128xf32, #tpu.memory_space<vmem>>, vector<1x128xf32>,
    return
  }
  func.func @transform_0(%arg0: i32) -> (i32, i32) {
    %c0_i32 = arith.constant 0 : i32
    %c0_i32_0 = arith.constant 0 : i32
    return %arg0, %c0_i32 : i32, i32
  }
  func.func @transform_1(%arg0: i32) -> (i32, i32) {
    %c0_i32 = arith.constant 0 : i32
    %c0_i32_0 = arith.constant 0 : i32
    return %arg0, %c0_i32 : i32, i32
  }
  func.func @transform_2(%arg0: i32) -> (i32, i32) {
    %c0_i32 = arith.constant 0 : i32
    %c0_i32_0 = arith.constant 0 : i32
    %c0_i32_1 = arith.constant 0 : i32
    return %c0_i32, %c0_i32_0 : i32, i32
  }
  func.func @transform_3(%arg0: i32) -> (i32, i32) {
    %c0_i32 = arith.constant 0 : i32
    %c0_i32_0 = arith.constant 0 : i32
    %c0_i32_1 = arith.constant 0 : i32
    return %c0_i32, %c0_i32_0 : i32, i32
  }
  func.func @transform_4(%arg0: i32) -> (i32, i32) {
    %c0_i32 = arith.constant 0 : i32
    %c0_i32_0 = arith.constant 0 : i32
    %c0_i32_1 = arith.constant 0 : i32
    return %c0_i32, %c0_i32_0 : i32, i32
  }
  func.func @transform_5(%arg0: i32) -> (i32, i32) {
    %c0_i32 = arith.constant 0 : i32
    %c0_i32_0 = arith.constant 0 : i32
    %c0_i32_1 = arith.constant 0 : i32
    return %c0_i32, %c0_i32_0 : i32, i32
  }
  func.func @transform_6(%arg0: i32) -> (i32, i32) {
    %c0_i32 = arith.constant 0 : i32
    %c0_i32_0 = arith.constant 0 : i32
    %c0_i32_1 = arith.constant 0 : i32
    return %c0_i32, %c0_i32_0 : i32, i32
  }
  func.func @transform_7(%arg0: i32) -> (i32, i32) {
    %c0_i32 = arith.constant 0 : i32
    %c0_i32_0 = arith.constant 0 : i32
    %c0_i32_1 = arith.constant 0 : i32
    return %c0_i32, %c0_i32_0 : i32, i32
  }
  func.func @transform_8(%arg0: i32) -> (i32, i32) {
    %c0_i32 = arith.constant 0 : i32
    %c0_i32_0 = arith.constant 0 : i32
    %c0_i32_1 = arith.constant 0 : i32
    return %c0_i32, %c0_i32_0 : i32, i32
  }
  func.func @transform_9(%arg0: i32) -> (i32, i32) {
    %c0_i32 = arith.constant 0 : i32
    %c0_i32_0 = arith.constant 0 : i32
    return %c0_i32, %arg0 : i32, i32
  }
}

</mosaic_0001>

<bundles_post_ra>
// kernel: _airfit_forward_jit.1
= control target key start
LH: loop header
LB: loop body
LE: loop exit
PB: predicated region body
PF: predicated region fallthrough
CT: control target
= control target key end

     0   :  { %vm125_vm0 = vcmask 490496   ;;  %v636_v1 = vmov 0   ;;  %v637_v47 = vmov 0.0   ;;  %vm638_vm1 = vmmov 0   ;;  %s819_s1 = inlined_call_operand.vmem [shape: bf16[128,60], index: 1, kind: input, shape index: {}]   ;;  %s820_s0 = inlined_call_operand.vmem [shape: bf16[128,60], index: 0, kind: input, shape index: {}]   ;;  %s821_s8 = inlined_call_operand.<no memory space> [shape: f32[1,1], index: 8, kind: input, shape index: {}]   ;;  %s822_s3 = inlined_call_operand.vmem [shape: bf16[25,60], index: 3, kind: input, shape index: {}]   ;;  %s823_s2 = inlined_call_operand.vmem [shape: bf16[25,60], index: 2, kind: input, shape index: {}]   ;;  %s824_s4 = inlined_call_operand.vmem [shape: f32[25,1], index: 4, kind: input, shape index: {}]   ;;  %s825_s6 = inlined_call_operand.vmem [shape: f32[10,1], index: 6, kind: input, shape index: {}]   ;;  %s826_s7 = inlined_call_operand.vmem [shape: f32[10,1], index: 7, kind: input, shape index: {}]   ;;  %s827_s5 = inlined_call_operand.vmem [shape: bf16[10,25], index: 5, kind: input, shape index: {}]   ;;  %s828_s9 = inlined_call_operand.vmem [shape: f32[1,128], index: 9, kind: output, shape index: {}]  }
   0x1   :  { %v615_v0 = vld [vmem:[%s819_s1] sm:$0xff]   ;;  %613 = vset.pattern.permute.xlu0 %v636_v1  ;;  %614 = vset.pattern.permute.xlu1 %v636_v1  ;;  %v14_v2 = vstv %s821_s8  ;;  %v617_v5 = vld [vmem:[%s819_s1 + $0x8] sm:$0xff]   ;;  %v619_v9 = vld [vmem:[%s819_s1 + $0x10] sm:$0xff]   ;;  %vm399_vm2 = vcmask 1043456   ;;  %vm400_vm7 = vcmask 1044480   ;;  %vm395_vm8 = vcmask 203776  }
   0x2   :  { %v616_v3 = vld [vmem:[%s820_s0] sm:$0xff]   ;;  %15 = vst [vmem:[#allocation2] sm:$0x1] %v14_v2  ;;  %593 = vmatprep.subr.msk.bf16.mxu1 %vm125_vm0, %v615_v0  ;;  %v133_v4 = vsel %vm125_vm0, %v615_v0, 0  ;;  %v618_v7 = vld [vmem:[%s820_s0 + $0x8] sm:$0xff]   ;;  %v136_v8 = vsel %vm125_vm0, %v617_v5, 0 }
   0x3   :  { %601 = vmatprep.subr.msk.bf16.mxu0 %vm125_vm0, %v616_v3  ;;  %542 = vmatpush3.bf16.xpose.msra.mxu1 %v133_v4  ;;  %v262_v6 = vsel %vm125_vm0, %v616_v3, 0  ;;  %v265_v10 = vsel %vm125_vm0, %v618_v7, 0  ;;  %v620_v11 = vld [vmem:[%s820_s0 + $0x10] sm:$0xff]   ;;  %v621_v12 = vld [vmem:[%s819_s1 + $0x18] sm:$0xff]   ;;  %v139_v14 = vsel %vm125_vm0, %v619_v9, 0  ;;  %v631_v15 = vld [vmem:[%s822_s3] sm:$0xff]  }
   0x4   :  { %562 = vmatpush3.bf16.xpose.msra.mxu0 %v262_v6  ;;  %594 = vmatprep.subr.msk.bf16.mxu1 %vm125_vm0, %v617_v5  ;;  %v622_v13 = vld [vmem:[%s820_s0 + $0x18] sm:$0xff]   ;;  %v268_v16 = vsel %vm125_vm0, %v620_v11, 0  ;;  %v632_v17 = vld [vmem:[%s823_s2] sm:$0xff]   ;;  %v336_v19 = vld [vmem:[%s824_s4 + $0x10] sm:$0xff]  ;;  %v142_v22 = vsel %vm125_vm0, %v621_v12, 0  ;;  %vm467_vm11 = vcmask 1041408  }
   0x5   :  { %602 = vmatprep.subr.msk.bf16.mxu0 %vm125_vm0, %v618_v7  ;;  %557 = vmatprep.mubr.msk.bf16.mxu1 %vm125_vm0, %v631_v15  ;;  %v334_v18 = vld [vmem:[%s824_s4] sm:$0xff]  ;;  %v335_v20 = vld [vmem:[%s824_s4 + $0x8] sm:$0xff]  ;;  %v337_v21 = vld [vmem:[%s824_s4 + $0x18] sm:$0x1]  ;;  %v271_v24 = vsel %vm125_vm0, %v622_v13, 0 }
   0x6   :  { %577 = vmatprep.mubr.msk.bf16.mxu0 %vm125_vm0, %v632_v17  ;;  %340 = vperm.xlu0 %613, %v334_v18   ;;  %v623_v23 = vld [vmem:[%s819_s1 + $0x20] sm:$0xff]   ;;  %v379_v26 = vld [vmem:[%s825_s6 + $0x8] sm:$0x3]  ;;  %v627_v36 = vld [vmem:[%s819_s1 + $0x30] sm:$0xff]  }
   0x7   :  { %350 = vperm.xlu1 %614, %v336_v19   ;;  %v624_v25 = vld [vmem:[%s820_s0 + $0x20] sm:$0xff]   ;;  %v454_v28 = vld [vmem:[%s826_s7 + $0x8] sm:$0x3]  ;;  %v145_v30 = vsel %vm125_vm0, %v623_v23, 0  ;;  %v628_v38 = vld [vmem:[%s820_s0 + $0x30] sm:$0xff]   ;;  %v151_v39 = vsel %vm125_vm0, %v627_v36, 0 }
   0x8   :  { %v378_v27 = vld [vmem:[%s825_s6] sm:$0xff]  ;;  %v625_v31 = vld [vmem:[%s819_s1 + $0x28] sm:$0xff]   ;;  %v274_v32 = vsel %vm125_vm0, %v624_v25, 0  ;;  %v629_v40 = vld [vmem:[%s819_s1 + $0x38] sm:$0xff]   ;;  %v280_v41 = vsel %vm125_vm0, %v628_v38, 0 }
   0x9   :  { %v453_v29 = vld [vmem:[%s826_s7] sm:$0xff]  ;;  %v626_v33 = vld [vmem:[%s820_s0 + $0x28] sm:$0xff]   ;;  %v148_v35 = vsel %vm125_vm0, %v625_v31, 0  ;;  %v630_v42 = vld [vmem:[%s820_s0 + $0x38] sm:$0xff]   ;;  %v154_v43 = vsel %vm125_vm0, %v629_v40, 0 }
   0xa   :  { %345 = vperm.xlu0 %613, %v335_v20   ;;  %v476_v34 = vld [vmem:[#allocation2] sm:$0x1]  ;;  %v277_v37 = vsel %vm125_vm0, %v626_v33, 0  ;;  %v283_v44 = vsel %vm125_vm0, %v630_v42, 0  ;;  %v633_v45 = vld [vmem:[%s822_s3 + $0x8] sm:$0x1f]  }
   0xb   :  { %544 = vmatpush3.bf16.xpose.msra.mxu1 %v136_v8  ;;  %355 = vperm.xlu1 %614, %v337_v21   ;;  %v634_v46 = vld [vmem:[%s823_s2 + $0x8] sm:$0x1f]   ;;  %v635_v18 = vld [vmem:[%s827_s5] sm:$0x1f]  }
   0xc   :  { %564 = vmatpush3.bf16.xpose.msra.mxu0 %v265_v10  ;;  %595 = vmatprep.subr.msk.bf16.mxu1 %vm125_vm0, %v619_v9  ;;  %v639_v10 = vmov 65535  }
   0xd   :  { %603 = vmatprep.subr.msk.bf16.mxu0 %vm125_vm0, %v620_v11  ;;  %v401_v11 = vsel %vm399_vm2, 4294967295, %v639_v10 }
   0xe   :  { %387 = vperm.xlu0 %613, %v379_v26  }
   0xf   :  { %382 = vperm.xlu1 %614, %v378_v27  }
  0x12   :  { %462 = vperm.xlu0 %613, %v454_v28  }
  0x13   :  { %546 = vmatpush3.bf16.xpose.msra.mxu1 %v139_v14  ;;  %457 = vperm.xlu1 %614, %v453_v29  }
  0x14   :  { %566 = vmatpush3.bf16.xpose.msra.mxu0 %v268_v16  ;;  %596 = vmatprep.subr.msk.bf16.mxu1 %vm125_vm0, %v621_v12  ;;  %v402_v16 = vsel %vm400_vm7, %v401_v11, 0 }
  0x15   :  { %604 = vmatprep.subr.msk.bf16.mxu0 %vm125_vm0, %v622_v13 }
  0x16   :  { %479 = vperm.xlu0 %613, %v476_v34  }
  0x1b   :  { %548 = vmatpush3.bf16.xpose.msra.mxu1 %v142_v22 }
  0x1c   :  { %568 = vmatpush3.bf16.xpose.msra.mxu0 %v271_v24  ;;  %597 = vmatprep.subr.msk.bf16.mxu1 %vm125_vm0, %v623_v23 }
  0x1d   :  { %605 = vmatprep.subr.msk.bf16.mxu0 %vm125_vm0, %v624_v25 }
  0x23   :  { %550 = vmatpush3.bf16.xpose.msra.mxu1 %v145_v30 }
  0x24   :  { %570 = vmatpush3.bf16.xpose.msra.mxu0 %v274_v32  ;;  %598 = vmatprep.subr.msk.bf16.mxu1 %vm125_vm0, %v625_v31 }
  0x25   :  { %606 = vmatprep.subr.msk.bf16.mxu0 %vm125_vm0, %v626_v33 }
  0x2b   :  { %552 = vmatpush3.bf16.xpose.msra.mxu1 %v148_v35 }
  0x2c   :  { %572 = vmatpush3.bf16.xpose.msra.mxu0 %v277_v37  ;;  %599 = vmatprep.subr.msk.bf16.mxu1 %vm125_vm0, %v627_v36  ;;  %v482_v36 = vlaneseq }
  0x2d   :  { %607 = vmatprep.subr.msk.bf16.mxu0 %vm125_vm0, %v628_v38 }
  0x33   :  { %554 = vmatpush3.bf16.xpose.msra.mxu1 %v151_v39  ;;  %v483_v39 = vshrl.u32 %v482_v36, 7 }
  0x34   :  { %574 = vmatpush3.bf16.xpose.msra.mxu0 %v280_v41  ;;  %600 = vmatprep.subr.msk.bf16.mxu1 %vm125_vm0, %v629_v40 }
  0x35   :  { %608 = vmatprep.subr.msk.bf16.mxu0 %vm125_vm0, %v630_v42  ;;  %v484_v42 = vsub.s32 0, %v483_v39 }
  0x3b   :  { %556 = vmatpush3.bf16.xpose.msra.mxu1 %v154_v43 }
  0x3c   :  { %576 = vmatpush3.bf16.xpose.msra.mxu0 %v283_v44  ;;  %581 = vmatprep.subr.bf16.mxu1 %v637_v47 }
  0x42   :  { %558 = vmatmul.mubr.msk.bf16.vlgmr.msra.gmra.mrb[0].mxu1 %vm125_vm0, %v633_v45 }
  0x43   :  { %578 = vmatmul.mubr.msk.bf16.vlgmr.msra.gmra.mrb[0].mxu0 %vm125_vm0, %v634_v46  ;;  %585 = vmatprep.mubr.msk.bf16.mxu1 %vm638_vm1, %v637_v47 }
  0x85   :  { %v341_v49 = vpop.permute.xlu0 %340 }
  0x86   :  { %v351_v48 = vpop.permute.xlu1 %350 }
  0x89   :  { %v346_v1 = vpop.permute.xlu0 %345 }
  0x8a   :  { %v356_v62 = vpop.permute.xlu1 %355 }
  0x8d   :  { %v388_v21 = vpop.permute.xlu0 %387 }
  0x8e   :  { %v383_v19 = vpop.permute.xlu1 %382 }
  0x91   :  { %v463_v30 = vpop.permute.xlu0 %462 }
  0x92   :  { %v458_v32 = vpop.permute.xlu1 %457 }
  0x95   :  { %v480_v44 = vpop.permute.xlu0 %479 }
  0x96   :  { %v485_v46 = vrot.slane %v480_v44, %v484_v42 }
 0x115   :  { %v559_v50 = vpop.f32.mrb[0].mxu1 }
 0x116   :  { %v579_v51 = vpop.f32.mrb[0].mxu0  ;;  %v190_v52 = vpop.f32.mrb[1].mxu1 }
 0x117   :  { %v328_v53 = vadd.f32 %v579_v51, %v559_v50  ;;  %v319_v54 = vpop.f32.mrb[1].mxu0  ;;  %v560_v55 = vpop.f32.mrb[2].mxu1 }
 0x118   :  { %v320_v56 = vadd.f32 %v319_v54, %v190_v52  ;;  %v580_v57 = vpop.f32.mrb[2].mxu0  ;;  %v193_v58 = vpop.f32.mrb[3].mxu1 }
 0x119   :  { %v360_v59 = vadd.f32 %v351_v48, %v328_v53  ;;  %v331_v60 = vadd.f32 %v580_v57, %v560_v55  ;;  %v322_v61 = vpop.f32.mrb[3].mxu0 }
 0x11a   :  { %v358_v63 = vadd.f32 %v341_v49, %v320_v56  ;;  %v323_v0 = vadd.f32 %v322_v61, %v193_v58 }
 0x11b   :  { %v368_v2 = vmul.f32 0.01, %v360_v59  ;;  %v361_v3 = vadd.f32 %v356_v62, %v331_v60  ;;  %vm364_vm3 = vcmp.gt.f32.partialorder %v360_v59, 0.0 }
 0x11c   :  { %v366_v4 = vmul.f32 0.01, %v358_v63  ;;  %v359_v5 = vadd.f32 %v346_v1, %v323_v0  ;;  %vm362_vm4 = vcmp.gt.f32.partialorder %v358_v63, 0.0 }
 0x11d   :  { %vm365_vm5 = vcmp.gt.f32.partialorder %v361_v3, 0.0  ;;  %v369_v6 = vmul.f32 0.01, %v361_v3  ;;  %v372_v8 = vsel %vm364_vm3, %v360_v59, %v368_v2 }
 0x11e   :  { %vm363_vm6 = vcmp.gt.f32.partialorder %v359_v5, 0.0  ;;  %v367_v7 = vmul.f32 0.01, %v359_v5  ;;  %v370_v12 = vsel %vm362_vm4, %v358_v63, %v366_v4 }
 0x11f   :  { %v373_v9 = vsel %vm365_vm5, %v361_v3, %v369_v6 }
 0x120   :  { %v377_v13 = vpack.c.bf16 %v373_v9, %v372_v8  ;;  %v371_v14 = vsel %vm363_vm6, %v359_v5, %v367_v7 }
 0x121   :  { %v376_v15 = vpack.c.bf16 %v371_v14, %v370_v12 }
 0x122   :  { %v404_v17 = vand.u32 %v402_v16, %v377_v13 }
 0x123   :  { %582 = vmatpush3.bf16.msra.mxu1 %v376_v15 }
 0x124   :  { %583 = vmatprep.subr.bf16.mxu1 %v637_v47 }
 0x127   :  { %584 = vmatpush3.bf16.msra.mxu1 %v404_v17 }
 0x12a   :  { %586 = vmatmul.mubr.msk.bf16.vlgmr.msra.gmra.mrb[4].mxu1 %vm395_vm8, %v635_v18 }
 0x1fd   :  { %v440_v20 = vpop.f32.mrb[4].mxu1 }
 0x1fe   :  { %v441_v22 = vadd.f32 %v440_v20, %v383_v19  ;;  %v587_v23 = vpop.f32.mrb[5].mxu1 }
 0x1ff   :  { %v443_v24 = vpop.f32.mrb[6].mxu1 }
 0x200   :  { %vm447_vm9 = vcmp.gt.f32.partialorder %v441_v22, 0.0  ;;  %v449_v25 = vmul.f32 0.01, %v441_v22  ;;  %v444_v26 = vadd.f32 %v443_v24, %v388_v21  ;;  %v588_v27 = vpop.f32.mrb[7].mxu1 }
 0x202   :  { %vm448_vm10 = vcmp.gt.f32.partialorder %v444_v26, 0.0  ;;  %v450_v28 = vmul.f32 0.01, %v444_v26  ;;  %v451_v29 = vsel %vm447_vm9, %v441_v22, %v449_v25 }
 0x203   :  { %v465_v34 = vmul.f32 %v458_v32, %v451_v29 }
 0x204   :  { %v452_v31 = vsel %vm448_vm10, %v444_v26, %v450_v28 }
 0x205   :  { %v466_v33 = vmul.f32 %v463_v30, %v452_v31 }
 0x207   :  { %v468_v35 = vsel %vm467_vm11, %v466_v33, 0.0 }
 0x208   :  { %v469_v37 = vadd.f32 %v468_v35, %v465_v34 }
 0x20a   :  { %v470_v38 = vrot.slane %v469_v37, 4 }
 0x20c   :  { %v471_v40 = vadd.f32 %v470_v38, %v469_v37 }
 0x20e   :  { %v472_v41 = vrot.slane %v471_v40, 2 }
 0x210   :  { %v473_v43 = vadd.f32 %v472_v41, %v471_v40 }
 0x212   :  { %v474_v45 = vrot.slane %v473_v43, 1 }
 0x214   :  { %v475_v47 = vadd.f32 %v474_v45, %v473_v43 }
 0x216   :  { %v486_v48 = vadd.f32 %v485_v46, %v475_v47 }
 0x218   :  { %487 = vst [vmem:[%s828_s9] sm:$0x1] %v486_v48 }

</bundles_post_ra>
